<compile_context>
chip_gen: v6e
topology: v6e:2x2x1
jax: 0.10.0
libtpu: 0.0.40
codegen_flags: <defaults>
</compile_context>

<pallas_src>
import jax
import jax.numpy as jnp
from jax import lax
from jax.experimental import pallas as pl
from jax.experimental.pallas import tpu as pltpu


def lstm_layer_kernel(x_ref, u_ref, w_ref, b_ref, c0_ref, h0_ref,
                      outs_ref, cfin_ref, hfin_ref,
                      xu_scr):
    T, B, E = x_ref.shape
    H = cfin_ref.shape[-1]

    # ---- Phase 1: input projection as ONE GEMM over all timesteps ----
    # (T*B, E) @ (E, 4H) + b  ->  stored as (T, B, 4H) in VMEM scratch.
    x_all = x_ref[...].reshape(T * B, E)
    xu = jnp.dot(x_all, u_ref[...], preferred_element_type=jnp.float32) + b_ref[...]
    xu_scr[...] = xu.reshape(T, B, 4 * H)

    w = w_ref[...]  # hoisted once; resident for the whole recurrence

    # ---- Phase 2: serial recurrence, fully unrolled inside one invocation ----
    def step(t, carry):
        c, h = carry
        gates = jnp.dot(h, w, preferred_element_type=jnp.float32) + xu_scr[t]
        # Columns were permuted offline to [f, i, o | g]:
        # one sigmoid over a contiguous (B, 3H) slab + one tanh over (B, H).
        sig = jax.nn.sigmoid(gates[:, : 3 * H])
        g = jnp.tanh(gates[:, 3 * H:])
        f = sig[:, 0:H]
        i = sig[:, H:2 * H]
        o = sig[:, 2 * H:3 * H]
        c_next = c * f + i * g
        h_next = o * jnp.tanh(c_next)
        outs_ref[t] = h_next
        return (c_next, h_next)

    c_fin, h_fin = lax.fori_loop(0, T, step,
                                 (c0_ref[...], h0_ref[...]),
                                 unroll=True)
    cfin_ref[...] = c_fin
    hfin_ref[...] = h_fin


def lstm_layer(x, u, bu, w, bw, c0, h0):
    T, B, E = x.shape
    H = c0.shape[-1]

    # Fold the two biases into one and permute gate columns [f,i,g,o] -> [f,i,o,g]
    # so the kernel can apply sigmoid to one contiguous slab.
    perm = jnp.concatenate([jnp.arange(0, H),
                            jnp.arange(H, 2 * H),
                            jnp.arange(3 * H, 4 * H),
                            jnp.arange(2 * H, 3 * H)])
    u_p = u[:, perm]
    w_p = w[:, perm]
    b_p = (bu + bw)[perm].reshape(1, 4 * H)

    out_shapes = (
        jax.ShapeDtypeStruct((T, B, H), jnp.float32),   # stacked hidden states
        jax.ShapeDtypeStruct((B, H), jnp.float32),      # final cell state
        jax.ShapeDtypeStruct((B, H), jnp.float32),      # final hidden state
    )

    vmem = pl.BlockSpec(memory_space=pltpu.MemorySpace.VMEM)
    return pl.pallas_call(
        lstm_layer_kernel,
        out_shape=out_shapes,
        in_specs=[vmem] * 6,
        out_specs=(vmem, vmem, vmem),
        scratch_shapes=[pltpu.VMEM((T, B, 4 * H), jnp.float32)],
    )(x, u_p, w_p, b_p, c0, h0)


def lstm_layer_ref(x, u, bu, w, bw, c0, h0):
    """Pure-JAX reference matching the PyTorch module semantics ([f,i,g,o])."""
    H = c0.shape[-1]

    def step(carry, xt):
        c, h = carry
        gates = xt @ u + bu + h @ w + bw
        f = jax.nn.sigmoid(gates[:, 0 * H:1 * H])
        i = jax.nn.sigmoid(gates[:, 1 * H:2 * H])
        g = jnp.tanh(gates[:, 2 * H:3 * H])
        o = jax.nn.sigmoid(gates[:, 3 * H:4 * H])
        c2 = c * f + i * g
        h2 = o * jnp.tanh(c2)
        return (c2, h2), h2

    (cF, hF), outs = jax.lax.scan(step, (c0, h0), x)
    return outs, cF, hF


if __name__ == "__main__":
    T, B, E, H = 8, 8, 16, 32          # seq=8, batch=8, emb=16, hidden=32

    key = jax.random.PRNGKey(0)
    kx, kc, kh, ku, kbu, kw, kbw = jax.random.split(key, 7)

    stdv = 1.0 / jnp.sqrt(jnp.float32(H))
    x = jax.random.normal(kx, (T, B, E), dtype=jnp.float32)
    c0 = jnp.zeros((B, H), dtype=jnp.float32)
    h0 = jnp.zeros((B, H), dtype=jnp.float32)
    u = jax.random.uniform(ku, (E, 4 * H), jnp.float32, -stdv, stdv)
    bu = jax.random.uniform(kbu, (4 * H,), jnp.float32, -stdv, stdv)
    w = jax.random.uniform(kw, (H, 4 * H), jnp.float32, -stdv, stdv)
    bw = jax.random.uniform(kbw, (4 * H,), jnp.float32, -stdv, stdv)

    outs, c_fin, h_fin = lstm_layer(x, u, bu, w, bw, c0, h0)
    jax.block_until_ready((outs, c_fin, h_fin))

    outs_r, c_r, h_r = lstm_layer_ref(x, u, bu, w, bw, c0, h0)
    assert jnp.allclose(outs, outs_r, atol=1e-5), "outputs mismatch"
    assert jnp.allclose(c_fin, c_r, atol=1e-5), "cell state mismatch"
    assert jnp.allclose(h_fin, h_r, atol=1e-5), "hidden state mismatch"

    print("KERNEL_OK")
</pallas_src>

<mosaic_0001>
module attributes {stable_mosaic.version = 11 : i64} {
  func.func @lstm_layer_kernel(%arg0: memref<8x8x16xf32, #tpu.memory_space<vmem>>, %arg1: memref<16x128xf32, #tpu.memory_space<vmem>>, %arg2: memref<32x128xf32, #tpu.memory_space<vmem>>, %arg3: memref<1x128xf32, #tpu.memory_space<vmem>>, %arg4: memref<8x32xf32, #tpu.memory_space<vmem>>, %arg5: memref<8x32xf32, #tpu.memory_space<vmem>>, %arg6: memref<8x8x32xf32, #tpu.memory_space<vmem>>, %arg7: memref<8x32xf32, #tpu.memory_space<vmem>>, %arg8: memref<8x32xf32, #tpu.memory_space<vmem>>, %arg9: memref<8x8x128xf32, #tpu.memory_space<vmem>>) attributes {dimension_semantics = [], scalar_prefetch = 0 : i64, scratch_operands = 1 : i64, tpu.core_type = #tpu.core_type<tc>} {
    %c0 = arith.constant 0 : index
    %c0_0 = arith.constant 0 : index
    %c0_1 = arith.constant 0 : index
    %0 = vector.load %arg0[%c0, %c0_0, %c0_1] : memref<8x8x16xf32, #tpu.memory_space<vmem>>, vector<8x8x16xf32>
    %1 = vector.shape_cast %0 : vector<8x8x16xf32> to vector<64x16xf32>
    %c0_2 = arith.constant 0 : index
    %c0_3 = arith.constant 0 : index
    %2 = vector.load %arg1[%c0_2, %c0_3] : memref<16x128xf32, #tpu.memory_space<vmem>>, vector<16x128xf32>
    %cst = arith.constant dense<0.000000e+00> : vector<64x128xf32>
    %3 = tpu.matmul %1, %2, %cst {dimension_numbers = #tpu.dot_dimension_numbers<[1], [0], [0], [1], [0, 0, 1, 1], [], []>} : vector<64x16xf32>, vector<16x128xf32>, vector<64x128xf32> -> vector<64x128xf32>
    %c0_4 = arith.constant 0 : index
    %c0_5 = arith.constant 0 : index
    %4 = vector.load %arg3[%c0_4, %c0_5] : memref<1x128xf32, #tpu.memory_space<vmem>>, vector<1x128xf32>
    %5 = vector.broadcast %4 : vector<1x128xf32> to vector<64x128xf32>
    %6 = arith.addf %3, %5 : vector<64x128xf32>
    %7 = vector.shape_cast %6 : vector<64x128xf32> to vector<8x8x128xf32>
    %c0_6 = arith.constant 0 : index
    %c0_7 = arith.constant 0 : index
    %c0_8 = arith.constant 0 : index
    %8 = vector.load %arg9[%c0_6, %c0_7, %c0_8] : memref<8x8x128xf32, #tpu.memory_space<vmem>>, vector<8x8x128xf32>
    tpu.vector_store %arg9[%c0_6, %c0_7, %c0_8], %7 {strides = array<i32>} : memref<8x8x128xf32, #tpu.memory_space<vmem>>, vector<8x8x128xf32>,
    %c0_9 = arith.constant 0 : index
    %c0_10 = arith.constant 0 : index
    %9 = vector.load %arg2[%c0_9, %c0_10] : memref<32x128xf32, #tpu.memory_space<vmem>>, vector<32x128xf32>
    %c0_11 = arith.constant 0 : index
    %c0_12 = arith.constant 0 : index
    %10 = vector.load %arg4[%c0_11, %c0_12] : memref<8x32xf32, #tpu.memory_space<vmem>>, vector<8x32xf32>
    %c0_13 = arith.constant 0 : index
    %c0_14 = arith.constant 0 : index
    %11 = vector.load %arg5[%c0_13, %c0_14] : memref<8x32xf32, #tpu.memory_space<vmem>>, vector<8x32xf32>
    %c0_i32 = arith.constant 0 : i32
    %cst_15 = arith.constant dense<0.000000e+00> : vector<8x128xf32>
    %12 = tpu.matmul %11, %9, %cst_15 {dimension_numbers = #tpu.dot_dimension_numbers<[1], [0], [0], [1], [0, 0, 1, 1], [], []>} : vector<8x32xf32>, vector<32x128xf32>, vector<8x128xf32> -> vector<8x128xf32>
    %13 = arith.index_cast %c0_i32 : i32 to index
    %c0_16 = arith.constant 0 : index
    %c0_17 = arith.constant 0 : index
    %14 = vector.load %arg9[%13, %c0_16, %c0_17] : memref<8x8x128xf32, #tpu.memory_space<vmem>>, vector<1x8x128xf32>
    %15 = vector.shape_cast %14 : vector<1x8x128xf32> to vector<8x128xf32>
    %16 = arith.addf %12, %15 : vector<8x128xf32>
    %17 = vector.extract_strided_slice %16 {offsets = [0, 0], sizes = [8, 96], strides = [1, 1]} : vector<8x128xf32> to vector<8x96xf32>
    %18 = arith.negf %17 : vector<8x96xf32>
    %19 = math.exp %18 : vector<8x96xf32>
    %cst_18 = arith.constant 1.000000e+00 : f32
    %20 = vector.broadcast %cst_18 : f32 to vector<8x96xf32>
    %21 = arith.addf %20, %19 : vector<8x96xf32>
    %22 = arith.divf %20, %21 : vector<8x96xf32>
    %23 = vector.extract_strided_slice %16 {offsets = [0, 96], sizes = [8, 32], strides = [1, 1]} : vector<8x128xf32> to vector<8x32xf32>
    %24 = math.tanh %23 : vector<8x32xf32>
    %25 = vector.extract_strided_slice %22 {offsets = [0, 0], sizes = [8, 32], strides = [1, 1]} : vector<8x96xf32> to vector<8x32xf32>
    %26 = vector.extract_strided_slice %22 {offsets = [0, 32], sizes = [8, 32], strides = [1, 1]} : vector<8x96xf32> to vector<8x32xf32>
    %27 = vector.extract_strided_slice %22 {offsets = [0, 64], sizes = [8, 32], strides = [1, 1]} : vector<8x96xf32> to vector<8x32xf32>
    %28 = arith.mulf %10, %25 : vector<8x32xf32>
    %29 = arith.mulf %26, %24 : vector<8x32xf32>
    %30 = arith.addf %28, %29 : vector<8x32xf32>
    %31 = math.tanh %30 : vector<8x32xf32>
    %32 = arith.mulf %27, %31 : vector<8x32xf32>
    %33 = arith.index_cast %c0_i32 : i32 to index
    %c0_19 = arith.constant 0 : index
    %c0_20 = arith.constant 0 : index
    %34 = vector.load %arg6[%33, %c0_19, %c0_20] : memref<8x8x32xf32, #tpu.memory_space<vmem>>, vector<1x8x32xf32>
    %35 = vector.shape_cast %34 : vector<1x8x32xf32> to vector<8x32xf32>
    %36 = vector.shape_cast %32 : vector<8x32xf32> to vector<1x8x32xf32>
    tpu.vector_store %arg6[%33, %c0_19, %c0_20], %36 {strides = array<i32>} : memref<8x8x32xf32, #tpu.memory_space<vmem>>, vector<1x8x32xf32>,
    %c1_i32 = arith.constant 1 : i32
    %cst_21 = arith.constant dense<0.000000e+00> : vector<8x128xf32>
    %37 = tpu.matmul %32, %9, %cst_21 {dimension_numbers = #tpu.dot_dimension_numbers<[1], [0], [0], [1], [0, 0, 1, 1], [], []>} : vector<8x32xf32>, vector<32x128xf32>, vector<8x128xf32> -> vector<8x128xf32>
    %38 = arith.index_cast %c1_i32 : i32 to index
    %c0_22 = arith.constant 0 : index
    %c0_23 = arith.constant 0 : index
    %39 = vector.load %arg9[%38, %c0_22, %c0_23] : memref<8x8x128xf32, #tpu.memory_space<vmem>>, vector<1x8x128xf32>
    %40 = vector.shape_cast %39 : vector<1x8x128xf32> to vector<8x128xf32>
    %41 = arith.addf %37, %40 : vector<8x128xf32>
    %42 = vector.extract_strided_slice %41 {offsets = [0, 0], sizes = [8, 96], strides = [1, 1]} : vector<8x128xf32> to vector<8x96xf32>
    %43 = arith.negf %42 : vector<8x96xf32>
    %44 = math.exp %43 : vector<8x96xf32>
    %cst_24 = arith.constant 1.000000e+00 : f32
    %45 = vector.broadcast %cst_24 : f32 to vector<8x96xf32>
    %46 = arith.addf %45, %44 : vector<8x96xf32>
    %47 = arith.divf %45, %46 : vector<8x96xf32>
    %48 = vector.extract_strided_slice %41 {offsets = [0, 96], sizes = [8, 32], strides = [1, 1]} : vector<8x128xf32> to vector<8x32xf32>
    %49 = math.tanh %48 : vector<8x32xf32>
    %50 = vector.extract_strided_slice %47 {offsets = [0, 0], sizes = [8, 32], strides = [1, 1]} : vector<8x96xf32> to vector<8x32xf32>
    %51 = vector.extract_strided_slice %47 {offsets = [0, 32], sizes = [8, 32], strides = [1, 1]} : vector<8x96xf32> to vector<8x32xf32>
    %52 = vector.extract_strided_slice %47 {offsets = [0, 64], sizes = [8, 32], strides = [1, 1]} : vector<8x96xf32> to vector<8x32xf32>
    %53 = arith.mulf %30, %50 : vector<8x32xf32>
    %54 = arith.mulf %51, %49 : vector<8x32xf32>
    %55 = arith.addf %53, %54 : vector<8x32xf32>
    %56 = math.tanh %55 : vector<8x32xf32>
    %57 = arith.mulf %52, %56 : vector<8x32xf32>
    %58 = arith.index_cast %c1_i32 : i32 to index
    %c0_25 = arith.constant 0 : index
    %c0_26 = arith.constant 0 : index
    %59 = vector.load %arg6[%58, %c0_25, %c0_26] : memref<8x8x32xf32, #tpu.memory_space<vmem>>, vector<1x8x32xf32>
    %60 = vector.shape_cast %59 : vector<1x8x32xf32> to vector<8x32xf32>
    %61 = vector.shape_cast %57 : vector<8x32xf32> to vector<1x8x32xf32>
    tpu.vector_store %arg6[%58, %c0_25, %c0_26], %61 {strides = array<i32>} : memref<8x8x32xf32, #tpu.memory_space<vmem>>, vector<1x8x32xf32>,
    %c2_i32 = arith.constant 2 : i32
    %cst_27 = arith.constant dense<0.000000e+00> : vector<8x128xf32>
    %62 = tpu.matmul %57, %9, %cst_27 {dimension_numbers = #tpu.dot_dimension_numbers<[1], [0], [0], [1], [0, 0, 1, 1], [], []>} : vector<8x32xf32>, vector<32x128xf32>, vector<8x128xf32> -> vector<8x128xf32>
    %63 = arith.index_cast %c2_i32 : i32 to index
    %c0_28 = arith.constant 0 : index
    %c0_29 = arith.constant 0 : index
    %64 = vector.load %arg9[%63, %c0_28, %c0_29] : memref<8x8x128xf32, #tpu.memory_space<vmem>>, vector<1x8x128xf32>
    %65 = vector.shape_cast %64 : vector<1x8x128xf32> to vector<8x128xf32>
    %66 = arith.addf %62, %65 : vector<8x128xf32>
    %67 = vector.extract_strided_slice %66 {offsets = [0, 0], sizes = [8, 96], strides = [1, 1]} : vector<8x128xf32> to vector<8x96xf32>
    %68 = arith.negf %67 : vector<8x96xf32>
    %69 = math.exp %68 : vector<8x96xf32>
    %cst_30 = arith.constant 1.000000e+00 : f32
    %70 = vector.broadcast %cst_30 : f32 to vector<8x96xf32>
    %71 = arith.addf %70, %69 : vector<8x96xf32>
    %72 = arith.divf %70, %71 : vector<8x96xf32>
    %73 = vector.extract_strided_slice %66 {offsets = [0, 96], sizes = [8, 32], strides = [1, 1]} : vector<8x128xf32> to vector<8x32xf32>
    %74 = math.tanh %73 : vector<8x32xf32>
    %75 = vector.extract_strided_slice %72 {offsets = [0, 0], sizes = [8, 32], strides = [1, 1]} : vector<8x96xf32> to vector<8x32xf32>
    %76 = vector.extract_strided_slice %72 {offsets = [0, 32], sizes = [8, 32], strides = [1, 1]} : vector<8x96xf32> to vector<8x32xf32>
    %77 = vector.extract_strided_slice %72 {offsets = [0, 64], sizes = [8, 32], strides = [1, 1]} : vector<8x96xf32> to vector<8x32xf32>
    %78 = arith.mulf %55, %75 : vector<8x32xf32>
    %79 = arith.mulf %76, %74 : vector<8x32xf32>
    %80 = arith.addf %78, %79 : vector<8x32xf32>
    %81 = math.tanh %80 : vector<8x32xf32>
    %82 = arith.mulf %77, %81 : vector<8x32xf32>
    %83 = arith.index_cast %c2_i32 : i32 to index
    %c0_31 = arith.constant 0 : index
    %c0_32 = arith.constant 0 : index
    %84 = vector.load %arg6[%83, %c0_31, %c0_32] : memref<8x8x32xf32, #tpu.memory_space<vmem>>, vector<1x8x32xf32>
    %85 = vector.shape_cast %84 : vector<1x8x32xf32> to vector<8x32xf32>
    %86 = vector.shape_cast %82 : vector<8x32xf32> to vector<1x8x32xf32>
    tpu.vector_store %arg6[%83, %c0_31, %c0_32], %86 {strides = array<i32>} : memref<8x8x32xf32, #tpu.memory_space<vmem>>, vector<1x8x32xf32>,
    %c3_i32 = arith.constant 3 : i32
    %cst_33 = arith.constant dense<0.000000e+00> : vector<8x128xf32>
    %87 = tpu.matmul %82, %9, %cst_33 {dimension_numbers = #tpu.dot_dimension_numbers<[1], [0], [0], [1], [0, 0, 1, 1], [], []>} : vector<8x32xf32>, vector<32x128xf32>, vector<8x128xf32> -> vector<8x128xf32>
    %88 = arith.index_cast %c3_i32 : i32 to index
    %c0_34 = arith.constant 0 : index
    %c0_35 = arith.constant 0 : index
    %89 = vector.load %arg9[%88, %c0_34, %c0_35] : memref<8x8x128xf32, #tpu.memory_space<vmem>>, vector<1x8x128xf32>
    %90 = vector.shape_cast %89 : vector<1x8x128xf32> to vector<8x128xf32>
    %91 = arith.addf %87, %90 : vector<8x128xf32>
    %92 = vector.extract_strided_slice %91 {offsets = [0, 0], sizes = [8, 96], strides = [1, 1]} : vector<8x128xf32> to vector<8x96xf32>
    %93 = arith.negf %92 : vector<8x96xf32>
    %94 = math.exp %93 : vector<8x96xf32>
    %cst_36 = arith.constant 1.000000e+00 : f32
    %95 = vector.broadcast %cst_36 : f32 to vector<8x96xf32>
    %96 = arith.addf %95, %94 : vector<8x96xf32>
    %97 = arith.divf %95, %96 : vector<8x96xf32>
    %98 = vector.extract_strided_slice %91 {offsets = [0, 96], sizes = [8, 32], strides = [1, 1]} : vector<8x128xf32> to vector<8x32xf32>
    %99 = math.tanh %98 : vector<8x32xf32>
    %100 = vector.extract_strided_slice %97 {offsets = [0, 0], sizes = [8, 32], strides = [1, 1]} : vector<8x96xf32> to vector<8x32xf32>
    %101 = vector.extract_strided_slice %97 {offsets = [0, 32], sizes = [8, 32], strides = [1, 1]} : vector<8x96xf32> to vector<8x32xf32>
    %102 = vector.extract_strided_slice %97 {offsets = [0, 64], sizes = [8, 32], strides = [1, 1]} : vector<8x96xf32> to vector<8x32xf32>
    %103 = arith.mulf %80, %100 : vector<8x32xf32>
    %104 = arith.mulf %101, %99 : vector<8x32xf32>
    %105 = arith.addf %103, %104 : vector<8x32xf32>
    %106 = math.tanh %105 : vector<8x32xf32>
    %107 = arith.mulf %102, %106 : vector<8x32xf32>
    %108 = arith.index_cast %c3_i32 : i32 to index
    %c0_37 = arith.constant 0 : index
    %c0_38 = arith.constant 0 : index
    %109 = vector.load %arg6[%108, %c0_37, %c0_38] : memref<8x8x32xf32, #tpu.memory_space<vmem>>, vector<1x8x32xf32>
    %110 = vector.shape_cast %109 : vector<1x8x32xf32> to vector<8x32xf32>
    %111 = vector.shape_cast %107 : vector<8x32xf32> to vector<1x8x32xf32>
    tpu.vector_store %arg6[%108, %c0_37, %c0_38], %111 {strides = array<i32>} : memref<8x8x32xf32, #tpu.memory_space<vmem>>, vector<1x8x32xf32>,
    %c4_i32 = arith.constant 4 : i32
    %cst_39 = arith.constant dense<0.000000e+00> : vector<8x128xf32>
    %112 = tpu.matmul %107, %9, %cst_39 {dimension_numbers = #tpu.dot_dimension_numbers<[1], [0], [0], [1], [0, 0, 1, 1], [], []>} : vector<8x32xf32>, vector<32x128xf32>, vector<8x128xf32> -> vector<8x128xf32>
    %113 = arith.index_cast %c4_i32 : i32 to index
    %c0_40 = arith.constant 0 : index
    %c0_41 = arith.constant 0 : index
    %114 = vector.load %arg9[%113, %c0_40, %c0_41] : memref<8x8x128xf32, #tpu.memory_space<vmem>>, vector<1x8x128xf32>
    %115 = vector.shape_cast %114 : vector<1x8x128xf32> to vector<8x128xf32>
    %116 = arith.addf %112, %115 : vector<8x128xf32>
    %117 = vector.extract_strided_slice %116 {offsets = [0, 0], sizes = [8, 96], strides = [1, 1]} : vector<8x128xf32> to vector<8x96xf32>
    %118 = arith.negf %117 : vector<8x96xf32>
    %119 = math.exp %118 : vector<8x96xf32>
    %cst_42 = arith.constant 1.000000e+00 : f32
    %120 = vector.broadcast %cst_42 : f32 to vector<8x96xf32>
    %121 = arith.addf %120, %119 : vector<8x96xf32>
    %122 = arith.divf %120, %121 : vector<8x96xf32>
    %123 = vector.extract_strided_slice %116 {offsets = [0, 96], sizes = [8, 32], strides = [1, 1]} : vector<8x128xf32> to vector<8x32xf32>
    %124 = math.tanh %123 : vector<8x32xf32>
    %125 = vector.extract_strided_slice %122 {offsets = [0, 0], sizes = [8, 32], strides = [1, 1]} : vector<8x96xf32> to vector<8x32xf32>
    %126 = vector.extract_strided_slice %122 {offsets = [0, 32], sizes = [8, 32], strides = [1, 1]} : vector<8x96xf32> to vector<8x32xf32>
    %127 = vector.extract_strided_slice %122 {offsets = [0, 64], sizes = [8, 32], strides = [1, 1]} : vector<8x96xf32> to vector<8x32xf32>
    %128 = arith.mulf %105, %125 : vector<8x32xf32>
    %129 = arith.mulf %126, %124 : vector<8x32xf32>
    %130 = arith.addf %128, %129 : vector<8x32xf32>
    %131 = math.tanh %130 : vector<8x32xf32>
    %132 = arith.mulf %127, %131 : vector<8x32xf32>
    %133 = arith.index_cast %c4_i32 : i32 to index
    %c0_43 = arith.constant 0 : index
    %c0_44 = arith.constant 0 : index
    %134 = vector.load %arg6[%133, %c0_43, %c0_44] : memref<8x8x32xf32, #tpu.memory_space<vmem>>, vector<1x8x32xf32>
    %135 = vector.shape_cast %134 : vector<1x8x32xf32> to vector<8x32xf32>
    %136 = vector.shape_cast %132 : vector<8x32xf32> to vector<1x8x32xf32>
    tpu.vector_store %arg6[%133, %c0_43, %c0_44], %136 {strides = array<i32>} : memref<8x8x32xf32, #tpu.memory_space<vmem>>, vector<1x8x32xf32>,
    %c5_i32 = arith.constant 5 : i32
    %cst_45 = arith.constant dense<0.000000e+00> : vector<8x128xf32>
    %137 = tpu.matmul %132, %9, %cst_45 {dimension_numbers = #tpu.dot_dimension_numbers<[1], [0], [0], [1], [0, 0, 1, 1], [], []>} : vector<8x32xf32>, vector<32x128xf32>, vector<8x128xf32> -> vector<8x128xf32>
    %138 = arith.index_cast %c5_i32 : i32 to index
    %c0_46 = arith.constant 0 : index
    %c0_47 = arith.constant 0 : index
    %139 = vector.load %arg9[%138, %c0_46, %c0_47] : memref<8x8x128xf32, #tpu.memory_space<vmem>>, vector<1x8x128xf32>
    %140 = vector.shape_cast %139 : vector<1x8x128xf32> to vector<8x128xf32>
    %141 = arith.addf %137, %140 : vector<8x128xf32>
    %142 = vector.extract_strided_slice %141 {offsets = [0, 0], sizes = [8, 96], strides = [1, 1]} : vector<8x128xf32> to vector<8x96xf32>
    %143 = arith.negf %142 : vector<8x96xf32>
    %144 = math.exp %143 : vector<8x96xf32>
    %cst_48 = arith.constant 1.000000e+00 : f32
    %145 = vector.broadcast %cst_48 : f32 to vector<8x96xf32>
    %146 = arith.addf %145, %144 : vector<8x96xf32>
    %147 = arith.divf %145, %146 : vector<8x96xf32>
    %148 = vector.extract_strided_slice %141 {offsets = [0, 96], sizes = [8, 32], strides = [1, 1]} : vector<8x128xf32> to vector<8x32xf32>
    %149 = math.tanh %148 : vector<8x32xf32>
    %150 = vector.extract_strided_slice %147 {offsets = [0, 0], sizes = [8, 32], strides = [1, 1]} : vector<8x96xf32> to vector<8x32xf32>
    %151 = vector.extract_strided_slice %147 {offsets = [0, 32], sizes = [8, 32], strides = [1, 1]} : vector<8x96xf32> to vector<8x32xf32>
    %152 = vector.extract_strided_slice %147 {offsets = [0, 64], sizes = [8, 32], strides = [1, 1]} : vector<8x96xf32> to vector<8x32xf32>
    %153 = arith.mulf %130, %150 : vector<8x32xf32>
    %154 = arith.mulf %151, %149 : vector<8x32xf32>
    %155 = arith.addf %153, %154 : vector<8x32xf32>
    %156 = math.tanh %155 : vector<8x32xf32>
    %157 = arith.mulf %152, %156 : vector<8x32xf32>
    %158 = arith.index_cast %c5_i32 : i32 to index
    %c0_49 = arith.constant 0 : index
    %c0_50 = arith.constant 0 : index
    %159 = vector.load %arg6[%158, %c0_49, %c0_50] : memref<8x8x32xf32, #tpu.memory_space<vmem>>, vector<1x8x32xf32>
    %160 = vector.shape_cast %159 : vector<1x8x32xf32> to vector<8x32xf32>
    %161 = vector.shape_cast %157 : vector<8x32xf32> to vector<1x8x32xf32>
    tpu.vector_store %arg6[%158, %c0_49, %c0_50], %161 {strides = array<i32>} : memref<8x8x32xf32, #tpu.memory_space<vmem>>, vector<1x8x32xf32>,
    %c6_i32 = arith.constant 6 : i32
    %cst_51 = arith.constant dense<0.000000e+00> : vector<8x128xf32>
    %162 = tpu.matmul %157, %9, %cst_51 {dimension_numbers = #tpu.dot_dimension_numbers<[1], [0], [0], [1], [0, 0, 1, 1], [], []>} : vector<8x32xf32>, vector<32x128xf32>, vector<8x128xf32> -> vector<8x128xf32>
    %163 = arith.index_cast %c6_i32 : i32 to index
    %c0_52 = arith.constant 0 : index
    %c0_53 = arith.constant 0 : index
    %164 = vector.load %arg9[%163, %c0_52, %c0_53] : memref<8x8x128xf32, #tpu.memory_space<vmem>>, vector<1x8x128xf32>
    %165 = vector.shape_cast %164 : vector<1x8x128xf32> to vector<8x128xf32>
    %166 = arith.addf %162, %165 : vector<8x128xf32>
    %167 = vector.extract_strided_slice %166 {offsets = [0, 0], sizes = [8, 96], strides = [1, 1]} : vector<8x128xf32> to vector<8x96xf32>
    %168 = arith.negf %167 : vector<8x96xf32>
    %169 = math.exp %168 : vector<8x96xf32>
    %cst_54 = arith.constant 1.000000e+00 : f32
    %170 = vector.broadcast %cst_54 : f32 to vector<8x96xf32>
    %171 = arith.addf %170, %169 : vector<8x96xf32>
    %172 = arith.divf %170, %171 : vector<8x96xf32>
    %173 = vector.extract_strided_slice %166 {offsets = [0, 96], sizes = [8, 32], strides = [1, 1]} : vector<8x128xf32> to vector<8x32xf32>
    %174 = math.tanh %173 : vector<8x32xf32>
    %175 = vector.extract_strided_slice %172 {offsets = [0, 0], sizes = [8, 32], strides = [1, 1]} : vector<8x96xf32> to vector<8x32xf32>
    %176 = vector.extract_strided_slice %172 {offsets = [0, 32], sizes = [8, 32], strides = [1, 1]} : vector<8x96xf32> to vector<8x32xf32>
    %177 = vector.extract_strided_slice %172 {offsets = [0, 64], sizes = [8, 32], strides = [1, 1]} : vector<8x96xf32> to vector<8x32xf32>
    %178 = arith.mulf %155, %175 : vector<8x32xf32>
    %179 = arith.mulf %176, %174 : vector<8x32xf32>
    %180 = arith.addf %178, %179 : vector<8x32xf32>
    %181 = math.tanh %180 : vector<8x32xf32>
    %182 = arith.mulf %177, %181 : vector<8x32xf32>
    %183 = arith.index_cast %c6_i32 : i32 to index
    %c0_55 = arith.constant 0 : index
    %c0_56 = arith.constant 0 : index
    %184 = vector.load %arg6[%183, %c0_55, %c0_56] : memref<8x8x32xf32, #tpu.memory_space<vmem>>, vector<1x8x32xf32>
    %185 = vector.shape_cast %184 : vector<1x8x32xf32> to vector<8x32xf32>
    %186 = vector.shape_cast %182 : vector<8x32xf32> to vector<1x8x32xf32>
    tpu.vector_store %arg6[%183, %c0_55, %c0_56], %186 {strides = array<i32>} : memref<8x8x32xf32, #tpu.memory_space<vmem>>, vector<1x8x32xf32>,
    %c7_i32 = arith.constant 7 : i32
    %cst_57 = arith.constant dense<0.000000e+00> : vector<8x128xf32>
    %187 = tpu.matmul %182, %9, %cst_57 {dimension_numbers = #tpu.dot_dimension_numbers<[1], [0], [0], [1], [0, 0, 1, 1], [], []>} : vector<8x32xf32>, vector<32x128xf32>, vector<8x128xf32> -> vector<8x128xf32>
    %188 = arith.index_cast %c7_i32 : i32 to index
    %c0_58 = arith.constant 0 : index
    %c0_59 = arith.constant 0 : index
    %189 = vector.load %arg9[%188, %c0_58, %c0_59] : memref<8x8x128xf32, #tpu.memory_space<vmem>>, vector<1x8x128xf32>
    %190 = vector.shape_cast %189 : vector<1x8x128xf32> to vector<8x128xf32>
    %191 = arith.addf %187, %190 : vector<8x128xf32>
    %192 = vector.extract_strided_slice %191 {offsets = [0, 0], sizes = [8, 96], strides = [1, 1]} : vector<8x128xf32> to vector<8x96xf32>
    %193 = arith.negf %192 : vector<8x96xf32>
    %194 = math.exp %193 : vector<8x96xf32>
    %cst_60 = arith.constant 1.000000e+00 : f32
    %195 = vector.broadcast %cst_60 : f32 to vector<8x96xf32>
    %196 = arith.addf %195, %194 : vector<8x96xf32>
    %197 = arith.divf %195, %196 : vector<8x96xf32>
    %198 = vector.extract_strided_slice %191 {offsets = [0, 96], sizes = [8, 32], strides = [1, 1]} : vector<8x128xf32> to vector<8x32xf32>
    %199 = math.tanh %198 : vector<8x32xf32>
    %200 = vector.extract_strided_slice %197 {offsets = [0, 0], sizes = [8, 32], strides = [1, 1]} : vector<8x96xf32> to vector<8x32xf32>
    %201 = vector.extract_strided_slice %197 {offsets = [0, 32], sizes = [8, 32], strides = [1, 1]} : vector<8x96xf32> to vector<8x32xf32>
    %202 = vector.extract_strided_slice %197 {offsets = [0, 64], sizes = [8, 32], strides = [1, 1]} : vector<8x96xf32> to vector<8x32xf32>
    %203 = arith.mulf %180, %200 : vector<8x32xf32>
    %204 = arith.mulf %201, %199 : vector<8x32xf32>
    %205 = arith.addf %203, %204 : vector<8x32xf32>
    %206 = math.tanh %205 : vector<8x32xf32>
    %207 = arith.mulf %202, %206 : vector<8x32xf32>
    %208 = arith.index_cast %c7_i32 : i32 to index
    %c0_61 = arith.constant 0 : index
    %c0_62 = arith.constant 0 : index
    %209 = vector.load %arg6[%208, %c0_61, %c0_62] : memref<8x8x32xf32, #tpu.memory_space<vmem>>, vector<1x8x32xf32>
    %210 = vector.shape_cast %209 : vector<1x8x32xf32> to vector<8x32xf32>
    %211 = vector.shape_cast %207 : vector<8x32xf32> to vector<1x8x32xf32>
    tpu.vector_store %arg6[%208, %c0_61, %c0_62], %211 {strides = array<i32>} : memref<8x8x32xf32, #tpu.memory_space<vmem>>, vector<1x8x32xf32>,
    %c8_i32 = arith.constant 8 : i32
    %c0_63 = arith.constant 0 : index
    %c0_64 = arith.constant 0 : index
    %212 = vector.load %arg7[%c0_63, %c0_64] : memref<8x32xf32, #tpu.memory_space<vmem>>, vector<8x32xf32>
    tpu.vector_store %arg7[%c0_63, %c0_64], %205 {strides = array<i32>} : memref<8x32xf32, #tpu.memory_space<vmem>>, vector<8x32xf32>,
    %c0_65 = arith.constant 0 : index
    %c0_66 = arith.constant 0 : index
    %213 = vector.load %arg8[%c0_65, %c0_66] : memref<8x32xf32, #tpu.memory_space<vmem>>, vector<8x32xf32>
    tpu.vector_store %arg8[%c0_65, %c0_66], %207 {strides = array<i32>} : memref<8x32xf32, #tpu.memory_space<vmem>>, vector<8x32xf32>,
    return
  }
}

</mosaic_0001>

<bundles_post_ra>
// kernel: tpu_custom_call.1
= control target key start
LH: loop header
LB: loop body
LE: loop exit
PB: predicated region body
PF: predicated region fallthrough
CT: control target
= control target key end

     0   :  { %14 = vsyncpa [#allocation4], 0  ;;  %s1793_s0 = inlined_call_operand.hbm [shape: f32[8,8,16], index: 0, kind: input, shape index: {}]   ;;  %s1794_s1 = inlined_call_operand.hbm [shape: f32[16,128], index: 1, kind: input, shape index: {}]   ;;  %s1795_s2 = inlined_call_operand.hbm [shape: f32[32,128], index: 2, kind: input, shape index: {}]   ;;  %s1796_s3 = inlined_call_operand.vmem [shape: f32[1,128], index: 3, kind: input, shape index: {}]   ;;  %s1797_s4 = inlined_call_operand.hbm [shape: f32[8,32], index: 4, kind: input, shape index: {}]   ;;  %s1798_s5 = inlined_call_operand.vmem [shape: f32[8,32], index: 5, kind: input, shape index: {}]   ;;  %s1799_s6 = inlined_call_operand.hbm [shape: f32[8,8,32], index: 6, kind: output, shape index: {0}]   ;;  %s1800_s7 = inlined_call_operand.hbm [shape: f32[8,32], index: 7, kind: output, shape index: {1}]   ;;  %s1801_s8 = inlined_call_operand.hbm [shape: f32[8,32], index: 8, kind: output, shape index: {2}]  }
   0x1   :  { %15 = vsyncpa [#allocation7], 0 }
   0x2   :  { %16 = vsyncpa [#allocation10], 0 }
   0x3   :  { %17 = vsyncpa [#allocation5], 0 }
   0x4   :  { %18 = vsyncpa [#allocation13], 0  ;;  %s1528_s27 = smov [#allocation6]   ;;  %s1529_s29 = smov [#allocation3]  }
   0x5   :  { %s36_s28 = sshll.u32 %s1528_s27, 4  ;;  %s24_s30 = sshll.u32 %s1529_s29, 4  ;;  %s37_s28 = int_to_ptr.vmem [resolvable:$true] %s36_s28  ;;  %s25_s30 = int_to_ptr.vmem [resolvable:$true] %s24_s30 }
   0x6   :  { %s1386_s9 = scalar_lea.vmem %s37_s28, 256  ;;  %p1391_p1 = scmp.lt.s32.totalorder %s37_s28, %s37_s28 }
   0x7   :  { %p1387_p0 = scmp.ne.s32.totalorder %s37_s28, %s1386_s9  ;;  %p1392_p2 = scmp.lt.s32.totalorder %s1386_s9, %s1386_s9 }
   0x9   :  { %p1393_p3 = por %p1392_p2, %p1391_p1 }
   0xb   :  { %p1394_p4 = pnand %p1393_p3, %p1387_p0 }
   0xd   :  { %1397 = shalt.err (!%p1394_p4)
}
   0xe   :  { %s1530_s10 = smov 128   ;;  %s1531_s11 = smov 8  }
   0xf   :  { %42 = dma.hbm_to_vmem [thread:$0]  %s1794_s1, 256, %s37_s28, [#allocation7], %s1530_s10, %s1530_s10, %s1531_s11  }
  0x10   :  { %s1406_s14 = scalar_lea.vmem %s25_s30, 1024  ;;  %p1411_p6 = scmp.lt.s32.totalorder %s25_s30, %s25_s30 }
  0x11   :  { %p1407_p5 = scmp.ne.s32.totalorder %s25_s30, %s1406_s14  ;;  %p1412_p7 = scmp.lt.s32.totalorder %s1406_s14, %s1406_s14 }
  0x13   :  { %p1413_p8 = por %p1412_p7, %p1411_p6 }
  0x15   :  { %p1414_p9 = pnand %p1413_p8, %p1407_p5 }
  0x17   :  { %1417 = shalt.err (!%p1414_p9)
}
  0x18   :  { %30 = dma.hbm_to_vmem [thread:$0]  %s1793_s0, 1024, %s25_s30, [#allocation4], %s1530_s10, %s1530_s10, %s1531_s11  }
  0x19   :  { %s1532_s17 = smov [#allocation8]   ;;  %s1533_s19 = smov [#allocation9]  }
  0x1a   :  { %s48_s18 = sshll.u32 %s1532_s17, 4  ;;  %s63_s20 = sshll.u32 %s1533_s19, 4  ;;  %s49_s18 = int_to_ptr.vmem [resolvable:$true] %s48_s18  ;;  %s64_s20 = int_to_ptr.vmem [resolvable:$true] %s63_s20 }
  0x1b   :  { %s1426_s1 = scalar_lea.vmem %s49_s18, 512  ;;  %p1431_p11 = scmp.lt.s32.totalorder %s49_s18, %s49_s18 }
  0x1c   :  { %p1427_p10 = scmp.ne.s32.totalorder %s49_s18, %s1426_s1  ;;  %p1432_p12 = scmp.lt.s32.totalorder %s1426_s1, %s1426_s1 }
  0x1e   :  { %p1433_p13 = por %p1432_p12, %p1431_p11 }
  0x20   :  { %p1434_p0 = pnand %p1433_p13, %p1427_p10 }
  0x22   :  { %1437 = shalt.err (!%p1434_p0)
}
  0x23   :  { %54 = dma.hbm_to_vmem [thread:$0]  %s1795_s2, 512, %s49_s18, [#allocation7], %s1530_s10, %s1530_s10, %s1531_s11  }
  0x24   :  { %s1446_s0 = scalar_lea.vmem %s64_s20, 128  ;;  %p1451_p2 = scmp.lt.s32.totalorder %s64_s20, %s64_s20 }
  0x25   :  { %p1447_p1 = scmp.ne.s32.totalorder %s64_s20, %s1446_s0  ;;  %p1452_p3 = scmp.lt.s32.totalorder %s1446_s0, %s1446_s0 }
  0x27   :  { %p1453_p4 = por %p1452_p3, %p1451_p2 }
  0x29   :  { %p1454_p5 = pnand %p1453_p4, %p1447_p1 }
  0x2b   :  { %1457 = shalt.err (!%p1454_p5)
}
  0x2c   :  { %66 = dma.hbm_to_vmem [thread:$0]  %s1797_s4, 128, %s64_s20, [#allocation10]  }
  0x2d   :  { %1518 = dma.done.wait [#allocation4], 1024  }
  0x2e   :  { %1519 = vsyncadd [#allocation4], 4294966272 }
  0x2f   :  { %1520 = dma.done.wait [#allocation7], 768  }
  0x30   :  { %1521 = vsyncadd [#allocation7], 4294966528 }
  0x31   :  { %1522 = dma.done.wait [#allocation10], 128  }
  0x32   :  { %1523 = vsyncadd [#allocation10], 4294967168  ;;  %v1534_v0 = vmov 0.0   ;;  %vm1535_vm0 = vmmov 0   ;;  %v90_v1 = vld [vmem:[#allocation6 + $0x8] sm:$0xff]  ;;  %v89_v3 = vld [vmem:[#allocation6] sm:$0xff] }
  0x33   :  { %1213 = vmatprep.subr.mxu1 %v1534_v0  ;;  %1221 = vmatprep.mubr.msk.f32.mxu1 %vm1535_vm0, %v1534_v0  ;;  %v1610_v2 = vld [vmem:[#allocation8 + $0x18] sm:$0xff]  ;;  %v1613_v4 = vld [vmem:[#allocation8 + $0x10] sm:$0xff]  ;;  %vm98_vm1 = vcmask 130048   ;;  %v1617_v7 = vld [vmem:[#allocation8 + $0x8] sm:$0xff]  ;;  %vm243_vm2 = vcmask 261120   ;;  %s1536_s26 = smov 64  }
  0x34   :  { %1197 = vmatprep.subr.mxu0 %v90_v1  ;;  %1214 = vmatpush3.msra.mxu1 %v1610_v2  ;;  %v81_v5 = vld [vmem:[#allocation3] sm:$0xff]  ;;  %v82_v6 = vld [vmem:[#allocation3 + $0x8] sm:$0xff]  ;;  %v1622_v8 = vld [vmem:[#allocation8] sm:$0xff]  ;;  %s1538_s27 = smov [#allocation12]  }
  0x35   :  { %1198 = vmatpush3.msra.mxu0 %v90_v1  ;;  %1215 = vmatprep.subr.mxu1 %v1534_v0  ;;  %v241_v9 = vld [vmem:[%s1798_s5] sm:$0xff]  ;;  %v240_v24 = vld [vmem:[#allocation9] sm:$0xff]  ;;  %v84_v47 = vld [vmem:[#allocation3 + $0x18] sm:$0xff]  ;;  %s1094_s28 = sshll.u32 %s1538_s27, 4  ;;  %s1095_s28 = int_to_ptr.vmem [resolvable:$true] %s1094_s28 }
  0x36   :  { %1199 = vmatprep.subr.mxu0 %v89_v3  ;;  %1216 = vmatpush3.msra.mxu1 %v1613_v4  ;;  %v1654_v11 = vld [vmem:[%s1796_s3] ss:$0 sm:$0xff]  ;;  %s1537_s3 = smov 96   ;;  %v83_v46 = vld [vmem:[#allocation3 + $0x10] sm:$0xff]  ;;  %v86_v49 = vld [vmem:[#allocation3 + $0x28] sm:$0xff]  ;;  %s1458_s29 = scalar_lea.vmem %s1095_s28, 128 }
  0x37   :  { %1200 = vmatpush3.msra.mxu0 %v89_v3  ;;  %1201 = vmatprep.mubr.msk.f32.mxu0 %vm98_vm1, %v81_v5  ;;  %v85_v48 = vld [vmem:[#allocation3 + $0x20] sm:$0xff]  ;;  %v87_v50 = vld [vmem:[#allocation3 + $0x30] sm:$0xff]  ;;  %v88_v51 = vld [vmem:[#allocation3 + $0x38] sm:$0xff]  ;;  %p1459_p6 = scmp.ne.s32.totalorder %s1095_s28, %s1458_s29  ;;  %p1463_p7 = scmp.lt.s32.totalorder %s1095_s28, %s1095_s28 }
  0x38   :  { %1217 = vmatprep.subr.mxu1 %v1534_v0  ;;  %1202 = vmatmul.mubr.msk.f32.vlgmr.msra.gmra.mxu0 %vm98_vm1, %v82_v6  ;;  %p1464_p8 = scmp.lt.s32.totalorder %s1458_s29, %s1458_s29 }
  0x39   :  { %1218 = vmatpush3.msra.mxu1 %v1617_v7  ;;  %1235 = vmatprep.subr.mxu0 %v1534_v0 }
  0x3a   :  { %1219 = vmatprep.subr.mxu1 %v1534_v0  ;;  %1236 = vmatpush3.msra.mxu0 %v1610_v2  ;;  %p1465_p9 = por %p1464_p8, %p1463_p7 }
  0x3b   :  { %1220 = vmatpush3.msra.mxu1 %v1622_v8  ;;  %1237 = vmatprep.subr.mxu0 %v1534_v0 }
  0x3c   :  { %1222 = vmatmul.mubr.msk.f32.vlgmr.msra.gmra.mxu1 %vm243_vm2, %v241_v9  ;;  %1224 = vmatprep.subr.mxu1 %v1534_v0  ;;  %p1466_p10 = pnand %p1465_p9, %p1459_p6 }
  0x3d   :  { %1225 = vmatpush3.msra.mxu1 %v1610_v2  ;;  %1232 = vmatprep.mubr.msk.f32.mxu1 %vm1535_vm0, %v1534_v0 }
  0x3e   :  { %1226 = vmatprep.subr.mxu1 %v1534_v0  ;;  %1238 = vmatpush3.msra.mxu0 %v1613_v4 }
  0x3f   :  { %1227 = vmatpush3.msra.mxu1 %v1613_v4  ;;  %1239 = vmatprep.subr.mxu0 %v1534_v0 }
  0x40   :  { %1228 = vmatprep.subr.mxu1 %v1534_v0  ;;  %1240 = vmatpush3.msra.mxu0 %v1617_v7 }
  0x41   :  { %1229 = vmatpush3.msra.mxu1 %v1617_v7  ;;  %1241 = vmatprep.subr.mxu0 %v1534_v0 }
  0x42   :  { %1230 = vmatprep.subr.mxu1 %v1534_v0  ;;  %1242 = vmatpush3.msra.mxu0 %v1622_v8 }
  0x43   :  { %1231 = vmatpush3.msra.mxu1 %v1622_v8  ;;  %1257 = vmatprep.subr.mxu0 %v1534_v0 }
  0x44   :  { %1246 = vmatprep.subr.mxu1 %v1534_v0  ;;  %1204 = vmatprep.mubr.msk.f32.mxu0 %vm98_vm1, %v83_v46 }
  0x45   :  { %1205 = vmatmul.mubr.msk.f32.gmra.mxu0 %vm98_vm1, %v84_v47 }
  0x46   :  { %1207 = vmatprep.mubr.msk.f32.mxu0 %vm98_vm1, %v85_v48 }
  0x49   :  { %1208 = vmatmul.mubr.msk.f32.gmra.mxu0 %vm98_vm1, %v86_v49 }
  0x4a   :  { %1210 = vmatprep.mubr.msk.f32.mxu0 %vm98_vm1, %v87_v50 }
  0x4d   :  { %1211 = vmatmul.mubr.msk.f32.gmra.mxu0 %vm98_vm1, %v88_v51 }
  0x4e   :  { %1243 = vmatprep.mubr.msk.f32.mxu0 %vm1535_vm0, %v1534_v0 }
  0xf8   :  { %v1203_v10 = vpop.f32.mrf.mxu0 }
  0xf9   :  { %v195_v32 = vadd.f32 %v1203_v10, %v1654_v11 }
  0xfa   :  { %v189_v12 = vpop.f32.mrf.mxu0 }
  0xfb   :  { %v190_v13 = vadd.f32 %v1654_v11, %v189_v12 }
  0xfc   :  { %v313_v14 = vpop.f32.mrf.mxu1 }
  0xfd   :  { %v314_v15 = vadd.f32 %v313_v14, %v190_v13 }
  0xfe   :  { %v1223_v16 = vpop.f32.mrf.mxu1 }
  0xff   :  { %1314 = vtanh.f32 %v314_v15  ;;  %v1132_v18 = vmul.f32 -1.442695, %v314_v15 }
 0x101   :  { %1316 = vpow2.f32 %v1132_v18 }
 0x105   :  { %v1206_v56 = vpop.f32.mrf.mxu0 }
 0x107   :  { %v199_v57 = vpop.f32.mrf.mxu0 }
 0x108   :  { %v200_v62 = vadd.f32 %v1654_v11, %v199_v57 }
 0x109   :  { %v1698_v58 = vpop.f32.mrf.mxu0 }
 0x10b   :  { %v1700_v59 = vpop.f32.mrf.mxu0 }
 0x10c   :  { %v1315_v17 = vpop.eup %1314 }
 0x10d   :  { %326 = vrot.lane.b32.xlu0 %v1315_v17, %s1536_s26  ;;  %v1702_v60 = vpop.f32.mrf.mxu0 }
 0x10e   :  { %v1317_v19 = vpop.eup %1316 }
 0x10f   :  { %v320_v20 = vadd.f32 1.0, %v1317_v19  ;;  %v1704_v61 = vpop.f32.mrf.mxu0 }
 0x111   :  { %1318 = vrcp.f32 %v320_v20 }
 0x11e   :  { %v1319_v21 = vpop.eup %1318 }
 0x11f   :  { %v324_v25 = vmul.f32 %v1319_v21, %v240_v24 }
 0x17f   :  { %v327_v22 = vpop.permute.xlu0 %326 }
 0x180   :  { %v329_v23 = vmul.f32 %v1319_v21, %v327_v22  ;;  %v205_v22 = vadd.f32 %v1206_v56, %v1654_v11 }
 0x182   :  { %331 = vrot.lane.b32.xlu0 %v329_v23, %s1537_s3 }
 0x1f4   :  { %v332_v26 = vpop.permute.xlu0 %331 }
 0x1f5   :  { %v334_v27 = vadd.f32 %v332_v26, %v324_v25 }
 0x1f7   :  { %1320 = vtanh.f32 %v334_v27 }
 0x204   :  { %v1321_v28 = vpop.eup %1320 }
 0x205   :  { %337 = vrot.lane.b32.xlu1 %v1321_v28, %s1536_s26 }
 0x277   :  { %v338_v29 = vpop.permute.xlu1 %337 }
 0x278   :  { %v340_v30 = vmul.f32 %v1319_v21, %v338_v29 }
 0x27a   :  { %342 = vrot.lane.b32.xlu1 %v340_v30, %s1536_s26 }
 0x2ec   :  { %v343_v31 = vpop.permute.xlu1 %342 }
 0x2ed   :  { %345 = vst.msk [vmem:[#allocation11] sm:$0xff] %vm243_vm2, %v343_v31  ;;  %1233 = vmatmul.mubr.msk.f32.vlgmr.msra.gmra.mxu1 %vm243_vm2, %v343_v31 }
 0x2ee   :  { %1247 = vmatpush3.msra.mxu1 %v1610_v2  ;;  %1254 = vmatprep.mubr.msk.f32.mxu1 %vm1535_vm0, %v1534_v0 }
 0x2ef   :  { %1248 = vmatprep.subr.mxu1 %v1534_v0 }
 0x2f0   :  { %1249 = vmatpush3.msra.mxu1 %v1613_v4 }
 0x2f1   :  { %1250 = vmatprep.subr.mxu1 %v1534_v0 }
 0x2f2   :  { %1251 = vmatpush3.msra.mxu1 %v1617_v7 }
 0x2f3   :  { %1252 = vmatprep.subr.mxu1 %v1534_v0 }
 0x2f4   :  { %1253 = vmatpush3.msra.mxu1 %v1622_v8 }
 0x2f5   :  { %1268 = vmatprep.subr.mxu1 %v1534_v0 }
 0x3ad   :  { %v416_v33 = vpop.f32.mrf.mxu1 }
 0x3ae   :  { %v417_v34 = vadd.f32 %v416_v33, %v195_v32 }
 0x3af   :  { %v1234_v35 = vpop.f32.mrf.mxu1 }
 0x3b0   :  { %1322 = vtanh.f32 %v417_v34  ;;  %v1134_v37 = vmul.f32 -1.442695, %v417_v34 }
 0x3b2   :  { %1324 = vpow2.f32 %v1134_v37 }
 0x3bd   :  { %v1323_v36 = vpop.eup %1322 }
 0x3be   :  { %429 = vrot.lane.b32.xlu0 %v1323_v36, %s1536_s26 }
 0x3bf   :  { %v1325_v38 = vpop.eup %1324 }
 0x3c0   :  { %v423_v39 = vadd.f32 1.0, %v1325_v38 }
 0x3c2   :  { %1326 = vrcp.f32 %v423_v39 }
 0x3cf   :  { %v1327_v40 = vpop.eup %1326 }
 0x3d0   :  { %v427_v43 = vmul.f32 %v1327_v40, %v334_v27 }
 0x430   :  { %v430_v41 = vpop.permute.xlu0 %429 }
 0x431   :  { %v432_v42 = vmul.f32 %v1327_v40, %v430_v41 }
 0x433   :  { %434 = vrot.lane.b32.xlu1 %v432_v42, %s1537_s3 }
 0x4a5   :  { %v435_v44 = vpop.permute.xlu1 %434 }
 0x4a6   :  { %v437_v45 = vadd.f32 %v435_v44, %v427_v43 }
 0x4a8   :  { %1328 = vtanh.f32 %v437_v45 }
 0x4b5   :  { %v1329_v52 = vpop.eup %1328 }
 0x4b6   :  { %440 = vrot.lane.b32.xlu0 %v1329_v52, %s1536_s26 }
 0x528   :  { %v441_v53 = vpop.permute.xlu0 %440 }
 0x529   :  { %v443_v54 = vmul.f32 %v1327_v40, %v441_v53  ;;  %v210_v40 = vadd.f32 %v1654_v11, %v1700_v59  ;;  %v215_v59 = vadd.f32 %v1698_v58, %v1654_v11 }
 0x52b   :  { %445 = vrot.lane.b32.xlu1 %v443_v54, %s1536_s26 }
 0x59d   :  { %v446_v55 = vpop.permute.xlu1 %445 }
 0x59e   :  { %449 = vst.msk [vmem:[#allocation11 + $0x8] sm:$0xff] %vm243_vm2, %v446_v55  ;;  %1244 = vmatmul.mubr.msk.f32.vlgmr.msra.gmra.mxu0 %vm243_vm2, %v446_v55 }
 0x59f   :  { %1258 = vmatpush3.msra.mxu0 %v1610_v2  ;;  %1265 = vmatprep.mubr.msk.f32.mxu0 %vm1535_vm0, %v1534_v0 }
 0x5a0   :  { %1259 = vmatprep.subr.mxu0 %v1534_v0 }
 0x5a1   :  { %1260 = vmatpush3.msra.mxu0 %v1613_v4 }
 0x5a2   :  { %1261 = vmatprep.subr.mxu0 %v1534_v0 }
 0x5a3   :  { %1262 = vmatpush3.msra.mxu0 %v1617_v7 }
 0x5a4   :  { %1263 = vmatprep.subr.mxu0 %v1534_v0 }
 0x5a5   :  { %1264 = vmatpush3.msra.mxu0 %v1622_v8 }
 0x5a6   :  { %1279 = vmatprep.subr.mxu0 %v1534_v0 }
 0x65e   :  { %v520_v63 = vpop.f32.mrf.mxu0 }
 0x65f   :  { %v521_v1 = vadd.f32 %v520_v63, %v200_v62 }
 0x660   :  { %v1245_v3 = vpop.f32.mrf.mxu0 }
 0x661   :  { %1330 = vtanh.f32 %v521_v1  ;;  %v1136_v6 = vmul.f32 -1.442695, %v521_v1 }
 0x663   :  { %1332 = vpow2.f32 %v1136_v6 }
 0x66e   :  { %v1331_v5 = vpop.eup %1330 }
 0x66f   :  { %533 = vrot.lane.b32.xlu0 %v1331_v5, %s1536_s26 }
 0x670   :  { %v1333_v9 = vpop.eup %1332 }
 0x671   :  { %v527_v10 = vadd.f32 1.0, %v1333_v9 }
 0x673   :  { %1334 = vrcp.f32 %v527_v10 }
 0x680   :  { %v1335_v12 = vpop.eup %1334 }
 0x681   :  { %v531_v15 = vmul.f32 %v1335_v12, %v437_v45 }
 0x6e1   :  { %v534_v13 = vpop.permute.xlu0 %533 }
 0x6e2   :  { %v536_v14 = vmul.f32 %v1335_v12, %v534_v13 }
 0x6e4   :  { %538 = vrot.lane.b32.xlu1 %v536_v14, %s1537_s3 }
 0x756   :  { %v539_v16 = vpop.permute.xlu1 %538 }
 0x757   :  { %v541_v17 = vadd.f32 %v539_v16, %v531_v15  ;;  %v220_v15 = vadd.f32 %v1654_v11, %v1704_v61 }
 0x759   :  { %1336 = vtanh.f32 %v541_v17 }
 0x766   :  { %v1337_v18 = vpop.eup %1336 }
 0x767   :  { %544 = vrot.lane.b32.xlu0 %v1337_v18, %s1536_s26 }
 0x7d9   :  { %v545_v19 = vpop.permute.xlu0 %544 }
 0x7da   :  { %v547_v20 = vmul.f32 %v1335_v12, %v545_v19 }
 0x7dc   :  { %549 = vrot.lane.b32.xlu1 %v547_v20, %s1536_s26 }
 0x84e   :  { %v550_v21 = vpop.permute.xlu1 %549 }
 0x84f   :  { %553 = vst.msk [vmem:[#allocation11 + $0x10] sm:$0xff] %vm243_vm2, %v550_v21  ;;  %1255 = vmatmul.mubr.msk.f32.vlgmr.msra.gmra.mxu1 %vm243_vm2, %v550_v21 }
 0x850   :  { %1269 = vmatpush3.msra.mxu1 %v1610_v2  ;;  %1276 = vmatprep.mubr.msk.f32.mxu1 %vm1535_vm0, %v1534_v0 }
 0x851   :  { %1270 = vmatprep.subr.mxu1 %v1534_v0 }
 0x852   :  { %1271 = vmatpush3.msra.mxu1 %v1613_v4 }
 0x853   :  { %1272 = vmatprep.subr.mxu1 %v1534_v0 }
 0x854   :  { %1273 = vmatpush3.msra.mxu1 %v1617_v7 }
 0x855   :  { %1274 = vmatprep.subr.mxu1 %v1534_v0 }
 0x856   :  { %1275 = vmatpush3.msra.mxu1 %v1622_v8 }
 0x857   :  { %1290 = vmatprep.subr.mxu1 %v1534_v0 }
 0x90f   :  { %v624_v23 = vpop.f32.mrf.mxu1 }
 0x910   :  { %v625_v24 = vadd.f32 %v624_v23, %v205_v22 }
 0x911   :  { %v1256_v25 = vpop.f32.mrf.mxu1 }
 0x912   :  { %1338 = vtanh.f32 %v625_v24  ;;  %v1138_v27 = vmul.f32 -1.442695, %v625_v24 }
 0x914   :  { %1340 = vpow2.f32 %v1138_v27 }
 0x91f   :  { %v1339_v26 = vpop.eup %1338 }
 0x920   :  { %637 = vrot.lane.b32.xlu0 %v1339_v26, %s1536_s26 }
 0x921   :  { %v1341_v28 = vpop.eup %1340 }
 0x922   :  { %v631_v29 = vadd.f32 1.0, %v1341_v28 }
 0x924   :  { %1342 = vrcp.f32 %v631_v29 }
 0x931   :  { %v1343_v30 = vpop.eup %1342 }
 0x932   :  { %v635_v33 = vmul.f32 %v1343_v30, %v541_v17 }
 0x992   :  { %v638_v31 = vpop.permute.xlu0 %637 }
 0x993   :  { %v640_v32 = vmul.f32 %v1343_v30, %v638_v31 }
 0x995   :  { %642 = vrot.lane.b32.xlu1 %v640_v32, %s1537_s3  ;;  %v225_v32 = vadd.f32 %v1702_v60, %v1654_v11 }
 0xa07   :  { %v643_v34 = vpop.permute.xlu1 %642 }
 0xa08   :  { %v645_v35 = vadd.f32 %v643_v34, %v635_v33 }
 0xa0a   :  { %1344 = vtanh.f32 %v645_v35 }
 0xa17   :  { %v1345_v36 = vpop.eup %1344 }
 0xa18   :  { %648 = vrot.lane.b32.xlu0 %v1345_v36, %s1536_s26 }
 0xa8a   :  { %v649_v37 = vpop.permute.xlu0 %648 }
 0xa8b   :  { %v651_v38 = vmul.f32 %v1343_v30, %v649_v37 }
 0xa8d   :  { %653 = vrot.lane.b32.xlu1 %v651_v38, %s1536_s26 }
 0xaff   :  { %v654_v39 = vpop.permute.xlu1 %653 }
 0xb00   :  { %657 = vst.msk [vmem:[#allocation11 + $0x18] sm:$0xff] %vm243_vm2, %v654_v39  ;;  %1266 = vmatmul.mubr.msk.f32.vlgmr.msra.gmra.mxu0 %vm243_vm2, %v654_v39 }
 0xb01   :  { %1280 = vmatpush3.msra.mxu0 %v1610_v2  ;;  %1287 = vmatprep.mubr.msk.f32.mxu0 %vm1535_vm0, %v1534_v0 }
 0xb02   :  { %1281 = vmatprep.subr.mxu0 %v1534_v0 }
 0xb03   :  { %1282 = vmatpush3.msra.mxu0 %v1613_v4 }
 0xb04   :  { %1283 = vmatprep.subr.mxu0 %v1534_v0 }
 0xb05   :  { %1284 = vmatpush3.msra.mxu0 %v1617_v7 }
 0xb06   :  { %1285 = vmatprep.subr.mxu0 %v1534_v0 }
 0xb07   :  { %1286 = vmatpush3.msra.mxu0 %v1622_v8 }
 0xbc0   :  { %v728_v41 = vpop.f32.mrf.mxu0 }
 0xbc1   :  { %v729_v42 = vadd.f32 %v728_v41, %v210_v40 }
 0xbc2   :  { %v1267_v43 = vpop.f32.mrf.mxu0 }
 0xbc3   :  { %1346 = vtanh.f32 %v729_v42  ;;  %v1140_v45 = vmul.f32 -1.442695, %v729_v42 }
 0xbc5   :  { %1348 = vpow2.f32 %v1140_v45 }
 0xbd0   :  { %v1347_v44 = vpop.eup %1346 }
 0xbd1   :  { %741 = vrot.lane.b32.xlu0 %v1347_v44, %s1536_s26 }
 0xbd2   :  { %v1349_v46 = vpop.eup %1348 }
 0xbd3   :  { %v735_v47 = vadd.f32 1.0, %v1349_v46 }
 0xbd5   :  { %1350 = vrcp.f32 %v735_v47 }
 0xbe2   :  { %v1351_v48 = vpop.eup %1350 }
 0xbe3   :  { %v739_v51 = vmul.f32 %v1351_v48, %v645_v35 }
 0xc43   :  { %v742_v49 = vpop.permute.xlu0 %741 }
 0xc44   :  { %v744_v50 = vmul.f32 %v1351_v48, %v742_v49 }
 0xc46   :  { %746 = vrot.lane.b32.xlu1 %v744_v50, %s1537_s3 }
 0xcb8   :  { %v747_v52 = vpop.permute.xlu1 %746 }
 0xcb9   :  { %v749_v53 = vadd.f32 %v747_v52, %v739_v51 }
 0xcbb   :  { %1352 = vtanh.f32 %v749_v53 }
 0xcc8   :  { %v1353_v54 = vpop.eup %1352 }
 0xcc9   :  { %752 = vrot.lane.b32.xlu0 %v1353_v54, %s1536_s26 }
 0xd3b   :  { %v753_v55 = vpop.permute.xlu0 %752 }
 0xd3c   :  { %v755_v56 = vmul.f32 %v1351_v48, %v753_v55 }
 0xd3e   :  { %757 = vrot.lane.b32.xlu1 %v755_v56, %s1536_s26 }
 0xdb0   :  { %v758_v57 = vpop.permute.xlu1 %757 }
 0xdb1   :  { %761 = vst.msk [vmem:[#allocation11 + $0x20] sm:$0xff] %vm243_vm2, %v758_v57  ;;  %1277 = vmatmul.mubr.msk.f32.vlgmr.msra.gmra.mxu1 %vm243_vm2, %v758_v57 }
 0xdb2   :  { %1291 = vmatpush3.msra.mxu1 %v1610_v2  ;;  %1298 = vmatprep.mubr.msk.f32.mxu1 %vm1535_vm0, %v1534_v0 }
 0xdb3   :  { %1292 = vmatprep.subr.mxu1 %v1534_v0 }
 0xdb4   :  { %1293 = vmatpush3.msra.mxu1 %v1613_v4 }
 0xdb5   :  { %1294 = vmatprep.subr.mxu1 %v1534_v0 }
 0xdb6   :  { %1295 = vmatpush3.msra.mxu1 %v1617_v7 }
 0xdb7   :  { %1296 = vmatprep.subr.mxu1 %v1534_v0 }
 0xdb8   :  { %1297 = vmatpush3.msra.mxu1 %v1622_v8 }
 0xe71   :  { %v832_v62 = vpop.f32.mrf.mxu1 }
 0xe72   :  { %v833_v2 = vadd.f32 %v832_v62, %v215_v59 }
 0xe73   :  { %v1278_v63 = vpop.f32.mrf.mxu1 }
 0xe74   :  { %1354 = vtanh.f32 %v833_v2  ;;  %v1142_v3 = vmul.f32 -1.442695, %v833_v2 }
 0xe76   :  { %1356 = vpow2.f32 %v1142_v3 }
 0xe81   :  { %v1355_v1 = vpop.eup %1354 }
 0xe82   :  { %845 = vrot.lane.b32.xlu0 %v1355_v1, %s1536_s26 }
 0xe83   :  { %v1357_v4 = vpop.eup %1356 }
 0xe84   :  { %v839_v5 = vadd.f32 1.0, %v1357_v4 }
 0xe86   :  { %1358 = vrcp.f32 %v839_v5 }
 0xe93   :  { %v1359_v7 = vpop.eup %1358 }
 0xe94   :  { %v843_v8 = vmul.f32 %v1359_v7, %v749_v53 }
 0xef4   :  { %v846_v6 = vpop.permute.xlu0 %845 }
 0xef5   :  { %v848_v0 = vmul.f32 %v1359_v7, %v846_v6 }
 0xef7   :  { %850 = vrot.lane.b32.xlu1 %v848_v0, %s1537_s3 }
 0xf69   :  { %v851_v9 = vpop.permute.xlu1 %850 }
 0xf6a   :  { %v853_v58 = vadd.f32 %v851_v9, %v843_v8 }
 0xf6c   :  { %1360 = vtanh.f32 %v853_v58 }
 0xf79   :  { %v1361_v10 = vpop.eup %1360 }
 0xf7a   :  { %856 = vrot.lane.b32.xlu0 %v1361_v10, %s1536_s26 }
 0xfec   :  { %v857_v12 = vpop.permute.xlu0 %856 }
 0xfed   :  { %v859_v13 = vmul.f32 %v1359_v7, %v857_v12 }
 0xfef   :  { %861 = vrot.lane.b32.xlu1 %v859_v13, %s1536_s26 }
0x1061   :  { %v862_v14 = vpop.permute.xlu1 %861 }
0x1062   :  { %865 = vst.msk [vmem:[#allocation11 + $0x28] sm:$0xff] %vm243_vm2, %v862_v14  ;;  %1288 = vmatmul.mubr.msk.f32.vlgmr.msra.gmra.mxu0 %vm243_vm2, %v862_v14 }
0x1122   :  { %v936_v16 = vpop.f32.mrf.mxu0 }
0x1123   :  { %v937_v17 = vadd.f32 %v936_v16, %v220_v15 }
0x1124   :  { %v1289_v18 = vpop.f32.mrf.mxu0 }
0x1125   :  { %1362 = vtanh.f32 %v937_v17  ;;  %v1144_v20 = vmul.f32 -1.442695, %v937_v17 }
0x1127   :  { %1364 = vpow2.f32 %v1144_v20 }
0x1132   :  { %v1363_v19 = vpop.eup %1362 }
0x1133   :  { %949 = vrot.lane.b32.xlu0 %v1363_v19, %s1536_s26 }
0x1134   :  { %v1365_v21 = vpop.eup %1364 }
0x1135   :  { %v943_v22 = vadd.f32 1.0, %v1365_v21 }
0x1137   :  { %1366 = vrcp.f32 %v943_v22 }
0x1144   :  { %v1367_v23 = vpop.eup %1366 }
0x1145   :  { %v947_v26 = vmul.f32 %v1367_v23, %v853_v58 }
0x11a5   :  { %v950_v24 = vpop.permute.xlu0 %949 }
0x11a6   :  { %v952_v25 = vmul.f32 %v1367_v23, %v950_v24 }
0x11a8   :  { %954 = vrot.lane.b32.xlu1 %v952_v25, %s1537_s3 }
0x121a   :  { %v955_v27 = vpop.permute.xlu1 %954 }
0x121b   :  { %v957_v61 = vadd.f32 %v955_v27, %v947_v26 }
0x121d   :  { %1368 = vtanh.f32 %v957_v61 }
0x122a   :  { %v1369_v28 = vpop.eup %1368 }
0x122b   :  { %960 = vrot.lane.b32.xlu0 %v1369_v28, %s1536_s26 }
0x129d   :  { %v961_v29 = vpop.permute.xlu0 %960 }
0x129e   :  { %v963_v30 = vmul.f32 %v1367_v23, %v961_v29 }
0x12a0   :  { %965 = vrot.lane.b32.xlu1 %v963_v30, %s1536_s26 }
0x1312   :  { %v966_v31 = vpop.permute.xlu1 %965 }
0x1313   :  { %969 = vst.msk [vmem:[#allocation11 + $0x30] sm:$0xff] %vm243_vm2, %v966_v31  ;;  %1299 = vmatmul.mubr.msk.f32.vlgmr.msra.gmra.mxu1 %vm243_vm2, %v966_v31 }
0x13d3   :  { %v1040_v33 = vpop.f32.mrf.mxu1 }
0x13d4   :  { %v1041_v34 = vadd.f32 %v1040_v33, %v225_v32 }
0x13d5   :  { %v1300_v35 = vpop.f32.mrf.mxu1 }
0x13d6   :  { %1370 = vtanh.f32 %v1041_v34  ;;  %v1146_v37 = vmul.f32 -1.442695, %v1041_v34 }
0x13d8   :  { %1372 = vpow2.f32 %v1146_v37 }
0x13e3   :  { %v1371_v36 = vpop.eup %1370 }
0x13e4   :  { %1053 = vrot.lane.b32.xlu0 %v1371_v36, %s1536_s26 }
0x13e5   :  { %v1373_v38 = vpop.eup %1372 }
0x13e6   :  { %v1047_v39 = vadd.f32 1.0, %v1373_v38 }
0x13e8   :  { %1374 = vrcp.f32 %v1047_v39 }
0x13f5   :  { %v1375_v40 = vpop.eup %1374 }
0x13f6   :  { %v1051_v43 = vmul.f32 %v1375_v40, %v957_v61 }
0x1456   :  { %v1054_v41 = vpop.permute.xlu0 %1053 }
0x1457   :  { %v1056_v42 = vmul.f32 %v1375_v40, %v1054_v41 }
0x1459   :  { %1058 = vrot.lane.b32.xlu1 %v1056_v42, %s1537_s3 }
0x14cb   :  { %v1059_v44 = vpop.permute.xlu1 %1058 }
0x14cc   :  { %v1061_v11 = vadd.f32 %v1059_v44, %v1051_v43 }
0x14ce   :  { %1376 = vtanh.f32 %v1061_v11  ;;  %1074 = vst.msk [vmem:[#allocation12] sm:$0xff] %vm243_vm2, %v1061_v11 }
0x14db   :  { %v1377_v60 = vpop.eup %1376 }
0x14dc   :  { %1064 = vrot.lane.b32.xlu0 %v1377_v60, %s1536_s26 }
0x14dd   :  { %1469 = shalt.err (!%p1466_p10)
}
0x14de   :  { %1097 = dma.vmem_to_hbm [thread:$0]  %s1095_s28, 128, %s1800_s7, [#allocation13]  }
0x14df   :  { %s1539_s12 = smov [#allocation11]   ;;  %s1540_s14 = smov [#allocation14]  }
0x14e0   :  { %s1081_s13 = sshll.u32 %s1539_s12, 4  ;;  %s1104_s15 = sshll.u32 %s1540_s14, 4  ;;  %s1082_s13 = int_to_ptr.vmem [resolvable:$true] %s1081_s13  ;;  %s1105_s15 = int_to_ptr.vmem [resolvable:$true] %s1104_s15 }
0x14e1   :  { %s1478_s16 = scalar_lea.vmem %s1082_s13, 1024  ;;  %p1483_p12 = scmp.lt.s32.totalorder %s1082_s13, %s1082_s13 }
0x14e2   :  { %p1479_p11 = scmp.ne.s32.totalorder %s1082_s13, %s1478_s16  ;;  %p1484_p13 = scmp.lt.s32.totalorder %s1478_s16, %s1478_s16 }
0x14e4   :  { %p1485_p0 = por %p1484_p13, %p1483_p12 }
0x14e6   :  { %p1486_p1 = pnand %p1485_p0, %p1479_p11 }
0x154e   :  { %v1065_v45 = vpop.permute.xlu0 %1064 }
0x154f   :  { %v1067_v46 = vmul.f32 %v1375_v40, %v1065_v45 }
0x1551   :  { %1069 = vrot.lane.b32.xlu1 %v1067_v46, %s1536_s26 }
0x15c3   :  { %v1070_v47 = vpop.permute.xlu1 %1069 }
0x15c4   :  { %1073 = vst.msk [vmem:[#allocation11 + $0x38] sm:$0xff] %vm243_vm2, %v1070_v47  ;;  %1075 = vst.msk [vmem:[#allocation14] sm:$0xff] %vm243_vm2, %v1070_v47 }
0x15c5   :  { %1489 = shalt.err (!%p1486_p1)
}
0x15c6   :  { %1087 = dma.vmem_to_hbm [thread:$0]  %s1082_s13, 1024, %s1799_s6, [#allocation5], %s1530_s10, %s1530_s10, %s1531_s11  }
0x15c7   :  { %s1498_s18 = scalar_lea.vmem %s1105_s15, 128  ;;  %p1503_p3 = scmp.lt.s32.totalorder %s1105_s15, %s1105_s15 }
0x15c8   :  { %p1499_p2 = scmp.ne.s32.totalorder %s1105_s15, %s1498_s18  ;;  %p1504_p4 = scmp.lt.s32.totalorder %s1498_s18, %s1498_s18 }
0x15ca   :  { %p1505_p5 = por %p1504_p4, %p1503_p3 }
0x15cc   :  { %p1506_p6 = pnand %p1505_p5, %p1499_p2 }
0x15ce   :  { %1509 = shalt.err (!%p1506_p6)
}
0x15cf   :  { %1107 = dma.vmem_to_hbm [thread:$0]  %s1105_s15, 128, %s1801_s8, [#allocation13]  }
0x15d0   :  { %1524 = dma.done.wait [#allocation5], 1024  }
0x15d1   :  { %1525 = vsyncadd [#allocation5], 4294966272 }
0x15d2   :  { %1526 = dma.done.wait [#allocation13], 256  }
0x15d3   :  { %1527 = vsyncadd [#allocation13], 4294967040 }
0x15d4   :  { %1117 = vsyncpa [#allocation4], 1 }
0x15d5   :  { %1118 = vsyncpa [#allocation7], 1 }
0x15d6   :  { %1119 = vsyncpa [#allocation10], 1 }
0x15d7   :  { %1120 = vsyncpa [#allocation5], 1 }
0x15d8   :  { %1121 = vsyncpa [#allocation13], 1 }

</bundles_post_ra>
